<compile_context>
chip_gen: v5e
topology: v5e:2x2
jax: 0.10.0
libtpu: 0.0.40
codegen_flags: <defaults>
</compile_context>

<pallas_src>
import functools
import math

import jax
import jax.numpy as jnp
import numpy as np
from jax.experimental import pallas as pl
from jax.experimental.pallas import tpu as pltpu


def _hide_lora_kernel(x_ref, ka_ref, kb_ref, va_ref, vb_ref, o_ref, *, scaling):
    # Blocks carry a leading size-1 dim (one (batch, seq-tile) grid step per call).
    x = x_ref[0]                      # (TL, D)
    ka = ka_ref[0]                    # (D, r)
    kb = kb_ref[0]                    # (r, D)
    va = va_ref[0]                    # (D, r)
    vb = vb_ref[0]                    # (r, D)

    # Low-rank path: fold `scaling` into the tiny (TL, r) intermediates.
    xk = jnp.dot(x, ka, preferred_element_type=jnp.float32) * scaling   # (TL, r)
    xv = jnp.dot(x, va, preferred_element_type=jnp.float32) * scaling   # (TL, r)

    out_k = jnp.dot(xk, kb, preferred_element_type=jnp.float32)         # (TL, D)
    out_v = jnp.dot(xv, vb, preferred_element_type=jnp.float32)         # (TL, D)

    # Single full-block, lane-dense store of the [k | v] columns.
    o_ref[0] = jnp.concatenate([out_k, out_v], axis=-1).astype(o_ref.dtype)


def hide_lora_forward_pallas(x, kA, kB, vA, vB, *, scaling, seq_tile=None):
    """x: (B, L, D); kA/vA: (Bw, D, r); kB/vB: (Bw, r, D) with Bw in {1, B}.

    Returns (B, L, 3*D) = concat([zeros_q, x@(kA@kB)*s, x@(vA@vB)*s], axis=-1).
    """
    B, L, D = x.shape
    Bw, _, r = kA.shape
    shared_weights = (Bw == 1)

    # Sequence tiling: keep per-step blocks modest; require L % TL == 0 and
    # (TL % 8 == 0 or TL == L) to satisfy the (8, 128) block-shape rule.
    if seq_tile is None:
        seq_tile = min(L, 512)
    if L % seq_tile != 0 or (seq_tile % 8 != 0 and seq_tile != L):
        seq_tile = L
    n_l = L // seq_tile

    # Weight blocks depend only on the batch grid index (resident across seq tiles);
    # in the shared (train) case every grid step reuses block 0.
    if shared_weights:
        w_idx = lambda b, l: (0, 0, 0)
    else:
        w_idx = lambda b, l: (b, 0, 0)

    kernel = functools.partial(_hide_lora_kernel, scaling=float(scaling))

    grid_spec = pltpu.PrefetchScalarGridSpec(
        num_scalar_prefetch=0,
        grid=(B, n_l),
        in_specs=[
            pl.BlockSpec((1, seq_tile, D), lambda b, l: (b, l, 0)),
            pl.BlockSpec((1, D, r), w_idx),
            pl.BlockSpec((1, r, D), w_idx),
            pl.BlockSpec((1, D, r), w_idx),
            pl.BlockSpec((1, r, D), w_idx),
        ],
        out_specs=pl.BlockSpec((1, seq_tile, 2 * D), lambda b, l: (b, l, 0)),
    )

    kv = pl.pallas_call(
        kernel,
        out_shape=jax.ShapeDtypeStruct((B, L, 2 * D), x.dtype),
        grid_spec=grid_spec,
        compiler_params=pltpu.CompilerParams(
            dimension_semantics=("parallel", "parallel")),
    )(x, kA, kB, vA, vB)

    # The q LoRA weights are plain zeros in the reference module, so that output block
    # is statically zero -- built here instead of being written from the kernel.
    # (Callers that only need k/v can consume `kv` directly and skip this concat.)
    q_zeros = jnp.zeros((B, L, D), x.dtype)
    return jnp.concatenate([q_zeros, kv], axis=-1)


class HideLoraPoolPallas:
    """JAX/Pallas port of HideLoraPool (forward pass)."""

    def __init__(self, pool_size, depth, dim, rank, lora_alpha=1, *, key):
        self.r = rank
        self.lora_alpha = lora_alpha
        self.scaling = lora_alpha / rank
        self.depth = depth
        self.pool_size = pool_size
        self.dim = dim

        kka, kkb, kva, kvb = jax.random.split(key, 4)
        # kaiming_uniform_(a=sqrt(5)) on a (dim, r) matrix -> U(-1/sqrt(r), 1/sqrt(r))
        bound = 1.0 / math.sqrt(rank)
        shape_A = (pool_size, depth, dim, rank)
        shape_B = (pool_size, depth, rank, dim)
        self.k_lora_A = jax.random.uniform(kka, shape_A, jnp.float32, -bound, bound)
        self.v_lora_A = jax.random.uniform(kva, shape_A, jnp.float32, -bound, bound)
        # NOTE: the reference reset_parameters() zeroes the *_B matrices (output would be
        # trivially zero); small deterministic random values are used instead so the
        # kernel compute path is exercised non-trivially.
        self.k_lora_B = 0.02 * jax.random.normal(kkb, shape_B, jnp.float32)
        self.v_lora_B = 0.02 * jax.random.normal(kvb, shape_B, jnp.float32)
        # q_lora_* are plain zero tensors (not parameters) in the reference.
        self.q_lora_A = jnp.zeros(shape_A, jnp.float32)
        self.q_lora_B = jnp.zeros(shape_B, jnp.float32)

    def forward(self, x, task_id=-1, depth_id=-1, train=False):
        if train:
            assert isinstance(task_id, int)
            # Single (task_id, depth_id) weight shared across the batch: pass one copy
            # (leading dim 1); the kernel reuses the same VMEM block for every grid step.
            kA = self.k_lora_A[task_id, depth_id][None]   # (1, D, r)
            kB = self.k_lora_B[task_id, depth_id][None]   # (1, r, D)
            vA = self.v_lora_A[task_id, depth_id][None]
            vB = self.v_lora_B[task_id, depth_id][None]
        else:
            task_ids = jnp.asarray(task_id, dtype=jnp.int32)
            kA = self.k_lora_A[task_ids, depth_id]        # (B, D, r)
            kB = self.k_lora_B[task_ids, depth_id]        # (B, r, D)
            vA = self.v_lora_A[task_ids, depth_id]
            vB = self.v_lora_B[task_ids, depth_id]
        out = hide_lora_forward_pallas(x, kA, kB, vA, vB, scaling=self.scaling)
        return {"lora_value": out}


def _reference_forward(x, kA, kB, vA, vB, scaling):
    """Pure-JAX mirror of the PyTorch eval branch (bmm of x with DxD delta weights)."""
    B, L, D = x.shape
    q = jnp.zeros((B, D, D), jnp.float32)
    k = jnp.einsum("bdr,brz->bdz", kA, kB)
    v = jnp.einsum("bdr,brz->bdz", vA, vB)
    w = jnp.concatenate([q, k, v], axis=-1) * scaling
    return jnp.einsum("bld,bdz->blz", x, w)


if __name__ == "__main__":
    pool_size, depth, dim, rank = 3, 2, 32, 4
    B, L = 2, 8

    key = jax.random.PRNGKey(0)
    k_mod, k_x = jax.random.split(key)
    mod = HideLoraPoolPallas(pool_size, depth, dim, rank, lora_alpha=1, key=k_mod)

    x = jax.random.normal(k_x, (B, L, dim), jnp.float32)

    # eval path: per-batch-element task ids
    task_ids = [1, 2]
    depth_id = 1
    out_eval = mod.forward(x, task_id=task_ids, depth_id=depth_id, train=False)
    lora_val = jax.block_until_ready(out_eval["lora_value"])

    tids = jnp.asarray(task_ids, jnp.int32)
    ref = _reference_forward(
        x,
        mod.k_lora_A[tids, depth_id], mod.k_lora_B[tids, depth_id],
        mod.v_lora_A[tids, depth_id], mod.v_lora_B[tids, depth_id],
        mod.scaling,
    )
    np.testing.assert_allclose(np.asarray(lora_val), np.asarray(ref), rtol=1e-5, atol=1e-5)

    # train path: single int task id shared across batch (un-batched weights)
    out_train = mod.forward(x, task_id=0, depth_id=0, train=True)
    lora_val_tr = jax.block_until_ready(out_train["lora_value"])
    tids0 = jnp.zeros((B,), jnp.int32)
    ref_tr = _reference_forward(
        x,
        mod.k_lora_A[tids0, 0], mod.k_lora_B[tids0, 0],
        mod.v_lora_A[tids0, 0], mod.v_lora_B[tids0, 0],
        mod.scaling,
    )
    np.testing.assert_allclose(np.asarray(lora_val_tr), np.asarray(ref_tr), rtol=1e-5, atol=1e-5)

    print("KERNEL_OK")
</pallas_src>

<mosaic_0001>
module attributes {stable_mosaic.version = 11 : i64} {
  func.func @_hide_lora_kernel(%arg0: i32, %arg1: i32, %arg2: memref<1x8x32xf32, #tpu.memory_space<vmem>>, %arg3: memref<1x32x4xf32, #tpu.memory_space<vmem>>, %arg4: memref<1x4x32xf32, #tpu.memory_space<vmem>>, %arg5: memref<1x32x4xf32, #tpu.memory_space<vmem>>, %arg6: memref<1x4x32xf32, #tpu.memory_space<vmem>>, %arg7: memref<1x8x64xf32, #tpu.memory_space<vmem>>) attributes {dimension_semantics = [#tpu.dimension_semantics<parallel>, #tpu.dimension_semantics<parallel>], iteration_bounds = array<i64: 2, 1>, scalar_prefetch = 0 : i64, scratch_operands = 0 : i64, tpu.core_type = #tpu.core_type<tc>, window_params = [{transform_indices = @transform_0, window_bounds = array<i64: 1, 8, 32>}, {transform_indices = @transform_1, window_bounds = array<i64: 1, 32, 4>}, {transform_indices = @transform_2, window_bounds = array<i64: 1, 4, 32>}, {transform_indices = @transform_3, window_bounds = array<i64: 1, 32, 4>}, {transform_indices = @transform_4, window_bounds = array<i64: 1, 4, 32>}, {transform_indices = @transform_5, window_bounds = array<i64: 1, 8, 64>}]} {
    %c0 = arith.constant 0 : index
    %c0_0 = arith.constant 0 : index
    %c0_1 = arith.constant 0 : index
    %0 = vector.load %arg2[%c0, %c0_0, %c0_1] : memref<1x8x32xf32, #tpu.memory_space<vmem>>, vector<1x8x32xf32>
    %1 = vector.shape_cast %0 : vector<1x8x32xf32> to vector<8x32xf32>
    %c0_2 = arith.constant 0 : index
    %c0_3 = arith.constant 0 : index
    %c0_4 = arith.constant 0 : index
    %2 = vector.load %arg3[%c0_2, %c0_3, %c0_4] : memref<1x32x4xf32, #tpu.memory_space<vmem>>, vector<1x32x4xf32>
    %3 = vector.shape_cast %2 : vector<1x32x4xf32> to vector<32x4xf32>
    %c0_5 = arith.constant 0 : index
    %c0_6 = arith.constant 0 : index
    %c0_7 = arith.constant 0 : index
    %4 = vector.load %arg4[%c0_5, %c0_6, %c0_7] : memref<1x4x32xf32, #tpu.memory_space<vmem>>, vector<1x4x32xf32>
    %5 = vector.shape_cast %4 : vector<1x4x32xf32> to vector<4x32xf32>
    %c0_8 = arith.constant 0 : index
    %c0_9 = arith.constant 0 : index
    %c0_10 = arith.constant 0 : index
    %6 = vector.load %arg5[%c0_8, %c0_9, %c0_10] : memref<1x32x4xf32, #tpu.memory_space<vmem>>, vector<1x32x4xf32>
    %7 = vector.shape_cast %6 : vector<1x32x4xf32> to vector<32x4xf32>
    %c0_11 = arith.constant 0 : index
    %c0_12 = arith.constant 0 : index
    %c0_13 = arith.constant 0 : index
    %8 = vector.load %arg6[%c0_11, %c0_12, %c0_13] : memref<1x4x32xf32, #tpu.memory_space<vmem>>, vector<1x4x32xf32>
    %9 = vector.shape_cast %8 : vector<1x4x32xf32> to vector<4x32xf32>
    %cst = arith.constant dense<0.000000e+00> : vector<8x4xf32>
    %10 = tpu.matmul %1, %3, %cst {dimension_numbers = #tpu.dot_dimension_numbers<[1], [0], [0], [1], [0, 0, 1, 1], [], []>} : vector<8x32xf32>, vector<32x4xf32>, vector<8x4xf32> -> vector<8x4xf32>
    %cst_14 = arith.constant 2.500000e-01 : f32
    %11 = vector.broadcast %cst_14 : f32 to vector<8x4xf32>
    %12 = arith.mulf %10, %11 : vector<8x4xf32>
    %cst_15 = arith.constant dense<0.000000e+00> : vector<8x4xf32>
    %13 = tpu.matmul %1, %7, %cst_15 {dimension_numbers = #tpu.dot_dimension_numbers<[1], [0], [0], [1], [0, 0, 1, 1], [], []>} : vector<8x32xf32>, vector<32x4xf32>, vector<8x4xf32> -> vector<8x4xf32>
    %cst_16 = arith.constant 2.500000e-01 : f32
    %14 = vector.broadcast %cst_16 : f32 to vector<8x4xf32>
    %15 = arith.mulf %13, %14 : vector<8x4xf32>
    %cst_17 = arith.constant dense<0.000000e+00> : vector<8x32xf32>
    %16 = tpu.matmul %12, %5, %cst_17 {dimension_numbers = #tpu.dot_dimension_numbers<[1], [0], [0], [1], [0, 0, 1, 1], [], []>} : vector<8x4xf32>, vector<4x32xf32>, vector<8x32xf32> -> vector<8x32xf32>
    %cst_18 = arith.constant dense<0.000000e+00> : vector<8x32xf32>
    %17 = tpu.matmul %15, %9, %cst_18 {dimension_numbers = #tpu.dot_dimension_numbers<[1], [0], [0], [1], [0, 0, 1, 1], [], []>} : vector<8x4xf32>, vector<4x32xf32>, vector<8x32xf32> -> vector<8x32xf32>
    %18 = tpu.concatenate %16, %17 in 1 : vector<8x32xf32>, vector<8x32xf32> -> vector<8x64xf32>
    %c0_19 = arith.constant 0 : index
    %c0_20 = arith.constant 0 : index
    %c0_21 = arith.constant 0 : index
    %19 = vector.load %arg7[%c0_19, %c0_20, %c0_21] : memref<1x8x64xf32, #tpu.memory_space<vmem>>, vector<1x8x64xf32>
    %20 = vector.shape_cast %19 : vector<1x8x64xf32> to vector<8x64xf32>
    %21 = vector.shape_cast %18 : vector<8x64xf32> to vector<1x8x64xf32>
    tpu.vector_store %arg7[%c0_19, %c0_20, %c0_21], %21 {strides = array<i32>} : memref<1x8x64xf32, #tpu.memory_space<vmem>>, vector<1x8x64xf32>,
    return
  }
  func.func @transform_0(%arg0: i32, %arg1: i32) -> (i32, i32, i32) {
    %c0_i32 = arith.constant 0 : i32
    %c0_i32_0 = arith.constant 0 : i32
    return %arg0, %arg1, %c0_i32 : i32, i32, i32
  }
  func.func @transform_1(%arg0: i32, %arg1: i32) -> (i32, i32, i32) {
    %c0_i32 = arith.constant 0 : i32
    %c0_i32_0 = arith.constant 0 : i32
    %c0_i32_1 = arith.constant 0 : i32
    return %arg0, %c0_i32, %c0_i32_0 : i32, i32, i32
  }
  func.func @transform_2(%arg0: i32, %arg1: i32) -> (i32, i32, i32) {
    %c0_i32 = arith.constant 0 : i32
    %c0_i32_0 = arith.constant 0 : i32
    %c0_i32_1 = arith.constant 0 : i32
    return %arg0, %c0_i32, %c0_i32_0 : i32, i32, i32
  }
  func.func @transform_3(%arg0: i32, %arg1: i32) -> (i32, i32, i32) {
    %c0_i32 = arith.constant 0 : i32
    %c0_i32_0 = arith.constant 0 : i32
    %c0_i32_1 = arith.constant 0 : i32
    return %arg0, %c0_i32, %c0_i32_0 : i32, i32, i32
  }
  func.func @transform_4(%arg0: i32, %arg1: i32) -> (i32, i32, i32) {
    %c0_i32 = arith.constant 0 : i32
    %c0_i32_0 = arith.constant 0 : i32
    %c0_i32_1 = arith.constant 0 : i32
    return %arg0, %c0_i32, %c0_i32_0 : i32, i32, i32
  }
  func.func @transform_5(%arg0: i32, %arg1: i32) -> (i32, i32, i32) {
    %c0_i32 = arith.constant 0 : i32
    %c0_i32_0 = arith.constant 0 : i32
    return %arg0, %arg1, %c0_i32 : i32, i32, i32
  }
}

</mosaic_0001>

<bundles_post_ra>
// kernel: tpu_custom_call.1
= control target key start
LH: loop header
LB: loop body
LE: loop exit
PB: predicated region body
PF: predicated region fallthrough
CT: control target
= control target key end

     0   :  { %10 = vsyncpa [#allocation3], 0  ;;  %s882_s0 = inlined_call_operand.vmem [shape: f32[2,8,32], index: 0, kind: input, shape index: {}]   ;;  %s883_s1 = inlined_call_operand.vmem [shape: f32[2,32,4], index: 1, kind: input, shape index: {}]   ;;  %s884_s2 = inlined_call_operand.vmem [shape: f32[2,4,32], index: 2, kind: input, shape index: {}]   ;;  %s885_s3 = inlined_call_operand.vmem [shape: f32[2,32,4], index: 3, kind: input, shape index: {}]   ;;  %s886_s4 = inlined_call_operand.vmem [shape: f32[2,4,32], index: 4, kind: input, shape index: {}]   ;;  %s887_s5 = inlined_call_operand.hbm [shape: f32[2,8,64], index: 5, kind: output, shape index: {}]  }
   0x1   :  { %12 = vsyncpa [#allocation3 + $0x1], 0  ;;  %s765_s18 = smov 0   ;;  %s767_s19 = smov 0  }
   0x2   :  { %s769_s20 = smov 0   ;;  %s771_s21 = smov 0  }
   0x3   :  { %s773_s22 = smov 0   ;;  %s775_s23 = smov 0  }
   0x4 LB: > { %s573_s24 = sadd.s32 4294967295, %s732_s23   ;;  %s574_s25 = sadd.s32 4294967294, %s732_s23   ;;  %s732_s23 = sphi %s775_s23, %s18_s23   ;;  %s728_s22 = sphi %s773_s22, %s894_s22   ;;  %s724_s21 = sphi %s771_s21, %s893_s21   ;;  %s720_s20 = sphi %s769_s20, %s892_s20   ;;  %s716_s19 = sphi %s767_s19, %s891_s19   ;;  %s712_s18 = sphi %s765_s18, %s890_s18  }
   0x5   : > { %s30_s26 = sadd.s32 1, %s728_s22  ;;  %s171_s27 = sadd.s32 1, %s720_s20 }
   0x6   : > { %p32_p0 = scmp.ge.s32.totalorder %s30_s26, 2  ;;  %p181_p1 = scmp.ne.s32.totalorder %s720_s20, %s716_s19 }
   0x7   : > { %p182_p2 = scmp.eq.s32.totalorder %s573_s24, 1  ;;  %p187_p3 = scmp.ne.s32.totalorder %s716_s19, %s712_s18 }
   0x8   : > { %s896_s26 = smov (%p32_p0, %s30_s26), 0  ;;  %p188_p5 = scmp.eq.s32.totalorder %s574_s25, 1 }
   0x9   : > { %p805_p4 = por %p182_p2, %p181_p1  ;;  %s166_s29 = ssub.s32 %s728_s22, %s896_s26 }
   0xa   : > { %p577_p6 = scmp.ge.s32.totalorder %s732_s23, 1  ;;  %p169_p7 = scmp.eq.s32.totalorder %s166_s29, 0 }
   0xb   : > { %p812_p8 = por %p188_p5, %p187_p3  ;;  %p246_p9 = scmp.lt.s32.totalorder %s732_s23, 3 }
   0xc   : > { %s818_s6 = scalar_select %p169_p7, %s720_s20, %s171_s27  }
   0xd   : > { %p247_p10 = pnand %p577_p6, %p246_p9 }
   0xe   : > { %p294_p11 = scmp.lt.s32.totalorder (!%p247_p10), %s724_s21, 1  ;;  %s593_s14 = sshll.u32 (!%p247_p10), %s724_s21, 3 }
   0xf   : > { %250 = sbr.rel (%p247_p10) target bundleno = 411 (0x19b), region = 40  ;;  %s449_s17 = scalar_lea.hbm (!%p247_p10), %s887_s5, %s593_s14 }
  0x10   : > { %s453_s27 = sshll.u32 (!%p247_p10), %s449_s17, 4  ;;  %s454_s27 = int_to_ptr.hbm [resolvable:$true] %s453_s27 }
  0x14   : > { %s822_s7 = scalar_select %p294_p11, %s724_s21, 1  ;;  %vm330_vm0 = vcmask 261120   ;;  %vm380_vm1 = vcmask 1043456   ;;  %vm376_vm2 = vcmask 31744   ;;  %vm435_vm3 = vcmask 523264  }
  0x16   : > { %s596_s8 = sshll.u32 %s822_s7, 5  ;;  %s579_s12 = sshll.u32 %s822_s7, 3 }
  0x17   : > { %s314_s11 = scalar_lea.vmem %s885_s3, %s596_s8  ;;  %s305_s15 = scalar_lea.vmem %s883_s1, %s596_s8 }
  0x18   : > { %v328_v0 = vld [vmem:[%s314_s11 + $0x18] sm:$0xff]  ;;  %v327_v1 = vld [vmem:[%s314_s11 + $0x10] sm:$0xff]  ;;  %v326_v3 = vld [vmem:[%s314_s11 + $0x8] sm:$0xff]  ;;  %s300_s24 = scalar_lea.vmem %s882_s0, %s579_s12  ;;  %s582_s25 = sshll.u32 %s822_s7, 2 }
  0x19   : > { %367 = vmatpush.msra.mxu1 %v328_v0  ;;  %v323_v2 = vld [vmem:[%s305_s15 + $0x18] sm:$0xff]  ;;  %v322_v4 = vld [vmem:[%s305_s15 + $0x10] sm:$0xff]  ;;  %v321_v5 = vld [vmem:[%s305_s15 + $0x8] sm:$0xff]  ;;  %s318_s8 = scalar_lea.vmem %s886_s4, %s582_s25  ;;  %s734_s7 = smov 32  }
  0x1a   : > { %346 = vmatpush.msra.mxu0 %v323_v2  ;;  %v325_v6 = vld [vmem:[%s314_s11] sm:$0xff]  ;;  %s309_s11 = scalar_lea.vmem %s884_s2, %s582_s25  ;;  %s291_s12 = sand.u32 1, %s716_s19  }
  0x1b   : > { %368 = vmatpush.msra.mxu1 %v327_v1  ;;  %v319_v7 = vld [vmem:[%s300_s24] sm:$0xff]  ;;  %s578_s13 = sshll.u32 %s291_s12, 3  ;;  %s438_s29 = scalar_lea.sflag [#allocation3], %s291_s12 }
  0x1c   : > { %347 = vmatpush.msra.mxu0 %v322_v4  ;;  %v320_v8 = vld [vmem:[%s305_s15] sm:$0xff]  ;;  %s293_s24 = scalar_lea.vmem [#allocation2], %s578_s13 }
  0x1d   : > { %369 = vmatpush.msra.mxu1 %v326_v3  ;;  %v329_v9 = vld [vmem:[%s318_s8] sm:$0xf]  ;;  %s451_s25 = sshll.u32 %s293_s24, 4  ;;  %s668_s8 = sshra.s32 %s454_s27, 4  ;;  %s452_s25 = int_to_ptr.vmem [resolvable:$true] %s451_s25  ;;  %s669_s8 = int_to_ptr.hbm [resolvable:$true] %s668_s8 }
  0x1e   : > { %348 = vmatpush.msra.mxu0 %v321_v5  ;;  %590 = vmatpush.msk.msra.mxu3 %vm380_vm1, %v329_v9  ;;  %v324_v10 = vld [vmem:[%s309_s11] sm:$0xf]  ;;  %s670_s21 = scalar_lea.hbm %s669_s8, 8  ;;  %s674_s11 = scalar_lea.hbm %s887_s5, 16 }
  0x1f   : > { %370 = vmatpush.msra.mxu1 %v325_v6  ;;  %588 = vmatpush.msk.msra.mxu2 %vm380_vm1, %v324_v10  ;;  %p671_p12 = scmp.ne.s32.totalorder %s669_s8, %s670_s21  ;;  %p675_p1 = scmp.lt.s32.totalorder %s669_s8, %s887_s5 }
  0x20   : > { %587 = vmatmul.msk.f32.vlgmr.msra.gmra.mxu1 %vm330_vm0, %v319_v7  ;;  %349 = vmatpush.msra.mxu0 %v320_v8  ;;  %p676_p2 = scmp.lt.s32.totalorder %s674_s11, %s670_s21 }
  0x21   : > { %586 = vmatmul.msk.f32.vlgmr.msra.gmra.mxu0 %vm330_vm0, %v319_v7  ;;  %p672_p13 = pnand %p671_p12, %p805_p4 }
  0x22   : > { %p677_p3 = por %p676_p2, %p675_p1 }
  0x23   : > { %p673_p0 = pneg %p672_p13 }
  0x25   : > { %p678_p5 = pnand %p677_p3, %p673_p0 }
  0x9d   : > { %v372_v11 = vpop.f32.mrf.mxu1 }
  0x9e   : > { %v375_v12 = vmul.f32 0.25, %v372_v11  ;;  %v351_v13 = vpop.f32.mrf.mxu0 }
  0x9f   : > { %v354_v14 = vmul.f32 0.25, %v351_v13 }
  0xa0   : > { %591 = vmatmul.msk.f32.vlgmr.msra.gmra.mxu3 %vm376_vm2, %v375_v12 }
  0xa1   : > { %589 = vmatmul.msk.f32.vlgmr.msra.gmra.mxu2 %vm376_vm2, %v354_v14 }
 0x123   : > { %v427_v15 = vpop.f32.mrf.mxu3 }
 0x124   : > { %431 = vrot.lane.b32.xlu0 %v427_v15, %s734_s7  ;;  %v401_v16 = vpop.f32.mrf.mxu2 }
 0x196   : > { %v432_v17 = vpop.permute.xlu0 %431 }
 0x197   : > { %v434_v18 = vsel %vm330_vm0, %v401_v16, %v432_v17 }
 0x198   : > { %436 = vst.msk [vmem:[%s293_s24] sm:$0xff] %vm435_vm3, %v434_v18 }
 0x199   : > { %681 = shalt.err (!%p678_p5)
}
 0x19a   : > { %598 = dma.vmem_to_hbm [thread:$0]  (%p805_p4), %s452_s25, 128, %s454_s27, %s438_s29  }
 0x19b PF: > { %p604_p6 = scmp.ge.s32.totalorder %s732_s23, 2  ;;  %s465_s12 = sand.u32 1, %s712_s18  }
 0x19c   : > { %s466_s14 = scalar_lea.sflag [#allocation3], %s465_s12 }
 0x19d   : > { %p601_p7 = pnand %p604_p6, %p812_p8 }
 0x19f   : > { %p602_p9 = pneg %p601_p7 }
 0x1a1   : > { %707 = dma.done.wait (%p602_p9), %s466_s14, 128  }
 0x1a2   : > { %709 = vsyncadd (%p602_p9), %s466_s14, 4294967168  ;;  %s18_s23 = sadd.s32 1, %s732_s23   ;;  %s890_s18 = smov %s716_s19 }
 0x1a3   : > { %p15_p10 = scmp.ge.s32.totalorder %s18_s23, 4   ;;  %s891_s19 = smov %s720_s20 }
 0x1a4   : > { %s892_s20 = smov %s818_s6  ;;  %s893_s21 = smov %s728_s22 }
 0x1a5   : > { %s894_s22 = smov %s896_s26  ;;  %17 = sbr.rel (!%p15_p10) target bundleno = 4 (0x4), region = 87 }
 0x1aa   :  { %472 = vsyncpa [#allocation3], 1 }
 0x1ab   :  { %474 = vsyncpa [#allocation3 + $0x1], 1 }

</bundles_post_ra>
